<compile_context>
chip_gen: v7x
topology: tpu7x:2x2x1
jax: 0.10.0
libtpu: 0.0.40
codegen_flags: <defaults>
</compile_context>

<pallas_src>
import math
import functools

import jax
import jax.numpy as jnp
from jax.experimental import pallas as pl
from jax.experimental.pallas import tpu as pltpu

_MiB = 1024 * 1024


def _build_pe_table(d_model: int, max_len: int) -> jnp.ndarray:
    """Positional-encoding buffer, matching the PyTorch __init__ loop verbatim:
        pe[pos, i]   = sin(pos / 10000 ** (2*i / d_model))   (i even)
        pe[pos, i+1] = cos(pos / 10000 ** (2*i / d_model))
    The non-standard 2*i exponent of the original module is reproduced on purpose."""
    pos = jnp.arange(max_len, dtype=jnp.float32)[:, None]            # (max_len, 1)
    i_even = jnp.arange(0, d_model, 2, dtype=jnp.float32)[None, :]   # (1, ceil(D/2))
    denom = jnp.power(10000.0, (2.0 * i_even) / float(d_model))
    ang = pos / denom                                                 # (max_len, ceil(D/2))
    pe = jnp.zeros((max_len, d_model), dtype=jnp.float32)
    pe = pe.at[:, 0::2].set(jnp.sin(ang))
    n_odd = d_model // 2   # matches torch's `if i + 1 < dim_model`
    pe = pe.at[:, 1::2].set(jnp.cos(ang[:, :n_odd]))
    return pe


def _pe_add_kernel(x_ref, pe_ref, o_ref, *, scale):
    # All refs are (tR, C): the batch dim is squeezed away, so this is a plain
    # same-layout VPU multiply-add with no per-step broadcast/reshape. The
    # explicit astype keeps the store legal for mixed-precision pe/x.
    o_ref[...] = (x_ref[...] * scale + pe_ref[...]).astype(o_ref.dtype)


def _vmem_capacity_bytes() -> int:
    """Physical per-core VMEM (64 MiB v7x, 128 MiB v5e/v6e); conservative fallback."""
    try:
        cap = getattr(pltpu.get_tpu_info(), "vmem_capacity_bytes", None)
        if cap:
            return int(cap)
    except Exception:
        pass
    return 64 * _MiB


def _sublane_multiple(dtype) -> int:
    # f32 -> 8, bf16/f16 -> 16, int8/fp8 -> 32 (native sublane packing).
    return max(8, 32 // max(1, jnp.dtype(dtype).itemsize))


def _choose_tile_rows(n_rows: int, n_cols: int, dtype, target_bytes: int) -> int:
    """Row tile: dtype-aware sublane multiple, ~target_bytes per block, or the
    full row extent when the array is small."""
    item = jnp.dtype(dtype).itemsize
    mult = _sublane_multiple(dtype)
    t = target_bytes // max(1, n_cols * item)
    t = (t // mult) * mult
    if t < mult:
        t = mult
    if t >= n_rows:
        return n_rows          # full extent is always a legal block dim
    return t


def _pe_add_tiled(x3: jnp.ndarray, pe2: jnp.ndarray, scale: float,
                  *, donate_x: bool = False) -> jnp.ndarray:
    """x3: (B, R, C); pe2: (R, C). Returns x3 * scale + pe2 (broadcast over B)."""
    B, R, C = x3.shape
    x_item = jnp.dtype(x3.dtype).itemsize
    pe_item = jnp.dtype(pe2.dtype).itemsize
    mult = _sublane_multiple(x3.dtype)

    vmem_cap = _vmem_capacity_bytes()
    # ~4 MiB blocks on v7x (64 MiB VMEM), up to 8 MiB on v5e/v6e (128 MiB):
    # large enough to amortize the ~0.35 us/step fixed cost against HBM BW,
    # small enough that the double-buffered x/out/pe blocks fit the explicit
    # VMEM limit below with headroom.
    target_bytes = min(8 * _MiB, max(2 * _MiB, vmem_cap // 16))

    tR = _choose_tile_rows(R, C, x3.dtype, target_bytes)

    # Guarantee >= 2 grid steps on a parallel axis when B == 1 so both of
    # v7x's TensorCores get work.
    if B == 1 and tR >= R and R > mult:
        half = -(-R // 2)                                   # ceil(R / 2)
        tR = min(R, ((half + mult - 1) // mult) * mult)     # round up to sublane mult

    n_r = pl.cdiv(R, tR)   # partial last block handled by Pallas edge masking

    # Explicit VMEM limit: x/out double-buffered + pe double-buffered + headroom.
    blk_x = tR * C * x_item
    blk_pe = tR * C * pe_item
    vmem_limit = 4 * blk_x + 2 * blk_pe + 8 * _MiB
    vmem_limit = int(min(max(vmem_limit, 16 * _MiB), int(vmem_cap * 0.9)))

    kernel = functools.partial(_pe_add_kernel, scale=scale)

    return pl.pallas_call(
        kernel,
        out_shape=jax.ShapeDtypeStruct((B, R, C), x3.dtype),
        grid_spec=pltpu.PrefetchScalarGridSpec(
            num_scalar_prefetch=0,
            # Row tiles outer, batch innermost: pe's block index is constant
            # across the inner axis, so the shared pe tile is DMA'd once per
            # row tile instead of once per (row, batch) step.
            grid=(n_r, B),
            in_specs=[
                pl.BlockSpec((pl.Squeezed(), tR, C), lambda s, b: (b, s, 0)),  # x
                pl.BlockSpec((tR, C), lambda s, b: (s, 0)),                    # pe
            ],
            out_specs=pl.BlockSpec((pl.Squeezed(), tR, C), lambda s, b: (b, s, 0)),
        ),
        compiler_params=pltpu.CompilerParams(
            dimension_semantics=("parallel", "parallel"),
            vmem_limit_bytes=vmem_limit,
        ),
        # Donating x avoids allocating a second (B, R, C) HBM buffer when the
        # caller no longer needs x after the add; off by default.
        input_output_aliases=({0: 0} if donate_x else {}),
    )(x3, pe2)


def positional_encoding_3d(x: jnp.ndarray, pe_table: jnp.ndarray,
                           *, donate_x: bool = False) -> jnp.ndarray:
    """x: (B, S, D); pe_table: (max_len, D). Returns x * sqrt(D) + pe_table[:S]."""
    B, S, D = x.shape
    scale = math.sqrt(float(D))        # sqrt(d_model), from the ORIGINAL D
    pe = pe_table[:S, :]               # static slice of the registered buffer

    # For sub-f32 activations, carry pe at x's precision: halves pe's DMA and
    # its VMEM block (tiny precision change; output dtype is x.dtype either way).
    if x.dtype in (jnp.bfloat16, jnp.float16):
        pe = pe.astype(x.dtype)

    if D % 128 == 0:
        # Lane-aligned model dim: direct (B, S, D) tiling, full-lane stores.
        return _pe_add_tiled(x, pe, scale, donate_x=donate_x)

    if (S * D) % 128 == 0:
        # Lane-sparse D but repackable: reshape (S, D) -> (S*D/128, 128) so
        # stores are full-lane vst. The row-major reshape preserves the
        # elementwise x<->pe correspondence; broadcast over B is unchanged.
        rows = (S * D) // 128
        out = _pe_add_tiled(x.reshape(B, rows, 128), pe.reshape(rows, 128),
                            scale, donate_x=donate_x)
        return out.reshape(B, S, D)

    # Un-repackable: zero-pad D up to the next multiple of 128 so the kernel
    # sees lane-dense blocks (full vst instead of masked vst.msk), then slice
    # the padding back off outside the kernel.
    d_pad = ((D + 127) // 128) * 128
    x_p = jnp.pad(x, ((0, 0), (0, 0), (0, d_pad - D)))
    pe_p = jnp.pad(pe, ((0, 0), (0, d_pad - D)))
    out = _pe_add_tiled(x_p, pe_p, scale)
    return out[..., :D]


def _reference(x, pe_table):
    B, S, D = x.shape
    return (x.astype(jnp.float32) * math.sqrt(float(D))
            + pe_table[None, :S, :].astype(jnp.float32))


if __name__ == "__main__":
    keys = jax.random.split(jax.random.PRNGKey(0), 4)

    def check(name, x, pe_table, atol=1e-5):
        out = jax.block_until_ready(positional_encoding_3d(x, pe_table))
        ref = _reference(x, pe_table)
        assert out.shape == x.shape and out.dtype == x.dtype, f"shape/dtype: {name}"
        assert jnp.allclose(out.astype(jnp.float32), ref, atol=atol, rtol=1e-5), (
            f"mismatch vs reference: {name}")

    # 1) Small D (32 < 128): lane-dense repack path (S*D multiple of 128).
    x1 = jax.random.normal(keys[0], (2, 8, 32), dtype=jnp.float32)
    check("repack", x1, _build_pe_table(d_model=32, max_len=64))

    # 2) Lane-aligned D = 128: direct (B, S, D) tiled path.
    x2 = jax.random.normal(keys[1], (2, 16, 128), dtype=jnp.float32)
    check("direct", x2, _build_pe_table(d_model=128, max_len=32))

    # 3) D = 20, S = 7 -> neither lane-aligned nor repackable: pad-to-128 path.
    x3 = jax.random.normal(keys[2], (2, 7, 20), dtype=jnp.float32)
    check("padded", x3, _build_pe_table(d_model=20, max_len=16))

    # 4) B = 1: exercises the forced >=2 grid steps split and a partial last
    #    row tile (R = 40, tR = 24 -> blocks of 24 and a partial 16-of-24).
    x4 = jax.random.normal(keys[3], (1, 40, 128), dtype=jnp.float32)
    check("split+partial", x4, _build_pe_table(d_model=128, max_len=64))

    print("KERNEL_OK")
</pallas_src>

<mosaic_0001>
module attributes {stable_mosaic.version = 11 : i64} {
  func.func @_pe_add_kernel(%arg0: i32, %arg1: i32, %arg2: memref<1x2x128xf32, #tpu.memory_space<vmem>>, %arg3: memref<2x128xf32, #tpu.memory_space<vmem>>, %arg4: memref<1x2x128xf32, #tpu.memory_space<vmem>>) attributes {dimension_semantics = [#tpu.dimension_semantics<parallel>, #tpu.dimension_semantics<parallel>], iteration_bounds = array<i64: 1, 2>, scalar_prefetch = 0 : i64, scratch_operands = 0 : i64, tpu.core_type = #tpu.core_type<tc>, window_params = [{transform_indices = @transform_0, window_bounds = array<i64: 1, 2, 128>}, {transform_indices = @transform_1, window_bounds = array<i64: 2, 128>}, {transform_indices = @transform_2, window_bounds = array<i64: 1, 2, 128>}]} {
    %c0 = arith.constant 0 : index
    %c0_0 = arith.constant 0 : index
    %c0_1 = arith.constant 0 : index
    %0 = vector.load %arg2[%c0, %c0_0, %c0_1] : memref<1x2x128xf32, #tpu.memory_space<vmem>>, vector<1x2x128xf32>
    %1 = vector.shape_cast %0 : vector<1x2x128xf32> to vector<2x128xf32>
    %cst = arith.constant 5.65685415 : f32
    %2 = vector.broadcast %cst : f32 to vector<2x128xf32>
    %3 = arith.mulf %1, %2 : vector<2x128xf32>
    %c0_2 = arith.constant 0 : index
    %c0_3 = arith.constant 0 : index
    %4 = vector.load %arg3[%c0_2, %c0_3] : memref<2x128xf32, #tpu.memory_space<vmem>>, vector<2x128xf32>
    %5 = arith.addf %3, %4 : vector<2x128xf32>
    %c0_4 = arith.constant 0 : index
    %c0_5 = arith.constant 0 : index
    %c0_6 = arith.constant 0 : index
    %6 = vector.load %arg4[%c0_4, %c0_5, %c0_6] : memref<1x2x128xf32, #tpu.memory_space<vmem>>, vector<1x2x128xf32>
    %7 = vector.shape_cast %6 : vector<1x2x128xf32> to vector<2x128xf32>
    %8 = vector.shape_cast %5 : vector<2x128xf32> to vector<1x2x128xf32>
    tpu.vector_store %arg4[%c0_4, %c0_5, %c0_6], %8 {strides = array<i32>} : memref<1x2x128xf32, #tpu.memory_space<vmem>>, vector<1x2x128xf32>,
    return
  }
  func.func @transform_0(%arg0: i32, %arg1: i32) -> (i32, i32, i32) {
    %c0_i32 = arith.constant 0 : i32
    %c0_i32_0 = arith.constant 0 : i32
    return %arg1, %arg0, %c0_i32 : i32, i32, i32
  }
  func.func @transform_1(%arg0: i32, %arg1: i32) -> (i32, i32) {
    %c0_i32 = arith.constant 0 : i32
    %c0_i32_0 = arith.constant 0 : i32
    return %arg0, %c0_i32 : i32, i32
  }
  func.func @transform_2(%arg0: i32, %arg1: i32) -> (i32, i32, i32) {
    %c0_i32 = arith.constant 0 : i32
    %c0_i32_0 = arith.constant 0 : i32
    return %arg1, %arg0, %c0_i32 : i32, i32, i32
  }
}

</mosaic_0001>

<bundles_post_ra>
// kernel: tpu_custom_call.1
= control target key start
LH: loop header
LB: loop body
LE: loop exit
PB: predicated region body
PF: predicated region fallthrough
CT: control target
= control target key end

     0   :  { %7 = vsyncpa [#allocation3], 0  ;;  %s690_s0 = inlined_call_operand.hbm [shape: f32[2,2,128], index: 0, kind: input, shape index: {}]   ;;  %s691_s1 = inlined_call_operand.vmem [shape: f32[2,128], index: 1, kind: input, shape index: {}]   ;;  %s692_s2 = inlined_call_operand.hbm [shape: f32[2,2,128], index: 2, kind: output, shape index: {}]  }
   0x1   :  { %9 = vsyncpa [#allocation3 + $0x1], 0 }
   0x2   :  { %10 = vsyncpa [#allocation4], 0 }
   0x3   :  { %12 = vsyncpa [#allocation4 + $0x1], 0  ;;  %s515_s9 = smov 0   ;;  %s517_s10 = smov 0  }
   0x4   :  { %s519_s11 = smov 0   ;;  %s521_s12 = smov 0  }
   0x5   :  { %s523_s13 = smov 0   ;;  %s525_s14 = smov 0  }
   0x6 LB: > { %s308_s15 = sadd.s32 4294967295, %s496_s14   ;;  %s309_s16 = sadd.s32 4294967294, %s496_s14   ;;  %s496_s14 = sphi %s525_s14, %s18_s14   ;;  %s492_s13 = sphi %s523_s13, %s708_s13   ;;  %s488_s12 = sphi %s521_s12, %s707_s12   ;;  %s484_s11 = sphi %s519_s11, %s706_s11   ;;  %s480_s10 = sphi %s517_s10, %s705_s10   ;;  %s476_s9 = sphi %s515_s9, %s704_s9  }
   0x7   : > { %s27_s17 = sadd.s32 1, %s492_s13  ;;  %s39_s18 = sadd.s32 1, %s484_s11 }
   0x8   : > { %p28_p0 = scmp.ge.s32.totalorder %s27_s17, 2  ;;  %p46_p1 = scmp.ne.s32.totalorder %s484_s11, %s480_s10 }
   0x9   : > { %p47_p2 = scmp.eq.s32.totalorder %s496_s14, 0  ;;  %p52_p3 = scmp.ne.s32.totalorder %s480_s10, %s476_s9 }
   0xa   : > { %s710_s17 = smov (%p28_p0, %s27_s17), 0  ;;  %p53_p5 = scmp.eq.s32.totalorder %s308_s15, 0 }
   0xb   : > { %p556_p4 = por %p47_p2, %p46_p1  ;;  %s34_s20 = ssub.s32 %s492_s13, %s710_s17 }
   0xc   : > { %p104_p6 = scmp.eq.s32.totalorder %s308_s15, 1  ;;  %p37_p7 = scmp.eq.s32.totalorder %s34_s20, 0 }
   0xd   : > { %p562_p8 = por %p53_p5, %p52_p3  ;;  %p110_p10 = scmp.eq.s32.totalorder %s309_s16, 1 }
   0xe   : > { %p566_p9 = por %p104_p6, %p46_p1  ;;  %p334_p13 = scmp.lt.s32.totalorder %s496_s14, 2 }
   0xf   : > { %s571_s23 = scalar_select %p37_p7, %s484_s11, %s39_s18  }
  0x10   : > { %s696_s22 = scalar_select %p566_p9, 1, 0 }
  0x11   : > { %p573_p11 = por %p110_p10, %p52_p3  ;;  %s137_s25 = sand.u32 1, %s484_s11  }
  0x12   : > { %s313_s26 = sshll.u32 %s137_s25, 1  ;;  %s314_s27 = sshll.u32 %s492_s13, 5 }
  0x13   : > { %s697_s24 = scalar_select %p573_p11, 1, 0 }
  0x14   : > { %s584_s30 = scalar_lea.hbm %s690_s0, %s314_s27  ;;  %s141_s3 = scalar_lea.vmem [#allocation2], %s313_s26 }
  0x15   : > { %s149_s4 = sshll.u32 %s141_s3, 4  ;;  %p590_p0 = pnand %p334_p13, %p556_p4  ;;  %s586_s4 = int_to_ptr.vmem [resolvable:$true] %s149_s4 }
  0x16   : > { %s138_s6 = scalar_lea.sflag [#allocation3], %s137_s25  ;;  %s384_s7 = scalar_lea.hbm %s584_s30, 32 }
  0x17   : > { %p385_p3 = scmp.ne.s32.totalorder %s584_s30, %s384_s7  ;;  %p386_p5 = pneg %p590_p0 }
  0x18   : > { %s389_s16 = scalar_lea.hbm %s690_s0, 64  ;;  %p390_p4 = scmp.lt.u32.totalorder %s584_s30, %s690_s0 }
  0x19   : > { %p387_p6 = pnand %p386_p5, %p385_p3  ;;  %p391_p10 = scmp.lt.u32.totalorder %s389_s16, %s384_s7 }
  0x1a   : > { %p393_p12 = scmp.lt.u32.totalorder %s384_s7, %s584_s30 }
  0x1b   : > { %p388_p7 = pneg %p387_p6  ;;  %p392_p13 = por %p391_p10, %p390_p4 }
  0x1d   : > { %p394_p1 = por %p393_p12, %p392_p13 }
  0x1f   : > { %p395_p2 = pnand %p394_p1, %p388_p7 }
  0x21   : > { %398 = shalt.err (!%p395_p2)
}
  0x22   : > { %s399_s20 = scalar_lea.vmem %s586_s4, 32  ;;  %s498_s25 = smov [#allocation2]  }
  0x23   : > { %p400_p3 = scmp.ne.s32.totalorder %s586_s4, %s399_s20  ;;  %s404_s26 = sshll.u32 %s498_s25, 4  ;;  %s405_s26 = int_to_ptr.vmem [resolvable:$false] %s404_s26 }
  0x24   : > { %s406_s27 = scalar_lea.vmem %s405_s26, 64  ;;  %p407_p9 = scmp.lt.s32.totalorder %s586_s4, %s405_s26 }
  0x25   : > { %p402_p6 = pnand %p400_p3, %p386_p5  ;;  %p408_p4 = scmp.lt.s32.totalorder %s406_s27, %s399_s20 }
  0x27   : > { %p403_p11 = pneg %p402_p6  ;;  %p409_p10 = por %p408_p4, %p407_p9 }
  0x29   : > { %p410_p12 = pnand %p409_p10, %p403_p11 }
  0x2b   : > { %413 = shalt.err (!%p410_p12)
}
  0x2c   : > { %329 = dma.hbm_to_vmem [thread:$0]  (!%p590_p0), %s584_s30, 32, %s586_s4, %s138_s6  }
  0x2d   : > { %p699_p1 = scmp.lt.s32.totalorder %s496_s14, 3  ;;  %p700_p2 = scmp.ge.s32.totalorder %s496_s14, 1 }
  0x2f   : > { %p155_p5 = pnand %p700_p2, %p699_p1 }
  0x30   : > { %s626_s28 = sand.u32 (!%p155_p5), 1, %s480_s10  }
  0x31   : > { %158 = sbr.rel (%p155_p5) target bundleno = 83 (0x53), region = 28  ;;  %s316_s29 = sshll.u32 (!%p155_p5), %s626_s28, 1 }
  0x32   : > { %s161_s3 = scalar_lea.sflag (!%p155_p5), [#allocation3], %s626_s28  ;;  %s164_s7 = scalar_lea.vmem (!%p155_p5), [#allocation2], %s316_s29 }
  0x38   : > { %467 = dma.done.wait (%p562_p8), %s161_s3, 32  }
  0x39   : > { %469 = vsyncadd (%p562_p8), %s161_s3, 4294967264  ;;  %v193_v0 = vld [vmem:[%s164_s7] sm:$0x3]  ;;  %s188_s5 = scalar_lea.vmem [#allocation5], %s316_s29  ;;  %s319_s8 = sshll.u32 %s488_s12, 5 }
  0x3a   : > { %v195_v1 = vld [vmem:[%s691_s1] sm:$0x3]  ;;  %s213_s6 = sshll.u32 %s188_s5, 4  ;;  %v194_v2 = vmul.f32 5.656854, %v193_v0  ;;  %s643_s21 = scalar_lea.hbm %s692_s2, %s319_s8  ;;  %s638_s6 = int_to_ptr.vmem [resolvable:$true] %s213_s6 }
  0x3b   : > { %s199_s18 = scalar_lea.sflag [#allocation4], %s626_s28  ;;  %s414_s19 = scalar_lea.vmem %s638_s6, 32 }
  0x3c   : > { %v196_v3 = vadd.f32 %v195_v1, %v194_v2  ;;  %p415_p8 = scmp.ne.s32.totalorder %s638_s6, %s414_s19  ;;  %p701_p9 = scmp.ne.s32.totalorder %s696_s22, 0 }
  0x3d   : > { %s499_s12 = smov [#allocation5]  }
  0x3e   : > { %197 = vst [vmem:[%s188_s5] sm:$0x3] %v196_v3  ;;  %p416_p11 = pnand %p415_p8, %p701_p9  ;;  %s418_s20 = sshll.u32 %s499_s12, 4  ;;  %s419_s20 = int_to_ptr.vmem [resolvable:$false] %s418_s20 }
  0x3f   : > { %s420_s25 = scalar_lea.vmem %s419_s20, 64  ;;  %p421_p7 = scmp.lt.s32.totalorder %s638_s6, %s419_s20 }
  0x40   : > { %p417_p0 = pneg %p416_p11  ;;  %p422_p13 = scmp.lt.s32.totalorder %s420_s25, %s414_s19 }
  0x42   : > { %p423_p3 = por %p422_p13, %p421_p7 }
  0x44   : > { %p424_p6 = pnand %p423_p3, %p417_p0 }
  0x46   : > { %427 = shalt.err (!%p424_p6)
}
  0x47   : > { %s428_s26 = scalar_lea.hbm %s643_s21, 32  ;;  %s432_s29 = scalar_lea.hbm %s692_s2, 64 }
  0x48   : > { %p429_p4 = scmp.ne.s32.totalorder %s643_s21, %s428_s26  ;;  %p433_p1 = scmp.lt.u32.totalorder %s643_s21, %s692_s2 }
  0x49   : > { %p434_p2 = scmp.lt.u32.totalorder %s432_s29, %s428_s26  ;;  %p436_p8 = scmp.lt.u32.totalorder %s428_s26, %s643_s21 }
  0x4a   : > { %p430_p10 = pnand %p429_p4, %p701_p9 }
  0x4b   : > { %p435_p5 = por %p434_p2, %p433_p1 }
  0x4c   : > { %p431_p12 = pneg %p430_p10 }
  0x4d   : > { %p437_p11 = por %p436_p8, %p435_p5 }
  0x4f   : > { %p438_p0 = pnand %p437_p11, %p431_p12 }
  0x51   : > { %441 = shalt.err (!%p438_p0)
}
  0x52   : > { %324 = dma.vmem_to_hbm [thread:$0]  (%p701_p9), %s638_s6, 32, %s643_s21, %s199_s18  }
  0x53 PF: > { %s225_s30 = sand.u32 1, %s476_s9   ;;  %p702_p7 = scmp.ne.s32.totalorder %s697_s24, 0 }
  0x54   : > { %p703_p13 = scmp.ge.s32.totalorder %s496_s14, 2  ;;  %s226_s4 = scalar_lea.sflag [#allocation4], %s225_s30 }
  0x56   : > { %p331_p3 = pnand %p703_p13, %p702_p7 }
  0x58   : > { %471 = dma.done.wait (!%p331_p3), %s226_s4, 32  }
  0x59   : > { %473 = vsyncadd (!%p331_p3), %s226_s4, 4294967264  ;;  %s18_s14 = sadd.s32 1, %s496_s14   ;;  %s704_s9 = smov %s480_s10 }
  0x5a   : > { %p15_p6 = scmp.ge.s32.totalorder %s18_s14, 4   ;;  %s705_s10 = smov %s484_s11 }
  0x5b   : > { %s706_s11 = smov %s571_s23  ;;  %s707_s12 = smov %s492_s13 }
  0x5c   : > { %s708_s13 = smov %s710_s17  ;;  %17 = sbr.rel (!%p15_p6) target bundleno = 6 (0x6), region = 76 }
  0x63   :  { %231 = vsyncpa [#allocation3], 1 }
  0x64   :  { %233 = vsyncpa [#allocation3 + $0x1], 1 }
  0x65   :  { %234 = vsyncpa [#allocation4], 1 }
  0x66   :  { %236 = vsyncpa [#allocation4 + $0x1], 1 }

</bundles_post_ra>
